<compile_context>
chip_gen: v6e
topology: v6e:2x2x1
jax: 0.10.0
libtpu: 0.0.40
codegen_flags: <defaults>
</compile_context>

<pallas_src>
import functools

import jax
import jax.numpy as jnp
from jax import lax
from jax.experimental import pallas as pl
from jax.experimental.pallas import tpu as pltpu

_LANES = 128
_SUBLANES = 8
_STRIP_ROWS = 128                 # inner compute strip: (128,128) f32 = 16 vregs
_TARGET_BLOCK_BYTES = 4 << 20     # ~4 MiB streaming block (Pallas double-buffers it)
_VMEM_LIMIT_BYTES = 32 << 20      # >= v5e's 16 MiB scoped default; fine on v6e/v7x
_LN2 = 0.6931471805599453


def _round_up(x, m):
    return ((x + m - 1) // m) * m


def _num_tensorcores():
    """Best-effort TensorCores-per-device count (v7x: 2). Defaults to 1 (always safe)."""
    try:
        info = pltpu.get_tpu_info()
    except Exception:
        return 1
    for attr in ("num_cores", "num_tensorcores", "cores_per_chip",
                 "num_cores_per_chip", "tensorcores_per_chip", "core_count"):
        v = getattr(info, attr, None)
        if isinstance(v, int) and v > 1:
            return v
    return 1


def _strip_loop(x_ref, *, sign, strip_r, n_strips, row_offset, total_rows, mask):
    """Sum softplus(sign*x) over the current tile, strip-mined so all intermediates
    stay in vregs.  Returns an (8, 128) f32 partial sum (a single vreg carry)."""

    def body(t, acc):
        base = pl.multiple_of(t * strip_r, strip_r)
        x = x_ref[pl.ds(base, strip_r), :].astype(jnp.float32)   # on-chip cast (bf16 ok)
        z = x * jnp.float32(sign)
        # Stable softplus(z) = max(z,0) + log1p(exp(-|z|))  == torch BCEWithLogits
        # against a constant 0/1 target.
        sp = jnp.maximum(z, 0.0) + jnp.log1p(jnp.exp(-jnp.abs(z)))
        if mask:
            rid = lax.broadcasted_iota(jnp.int32, sp.shape, 0) + base + row_offset
            sp = jnp.where(rid < total_rows, sp, 0.0)
        # (strip_r,128)->(strip_r//8,8,128) is layout-preserving; the axis-0 sum is
        # plain VPU vreg adds (no cross-lane work).
        return acc + sp.reshape(strip_r // _SUBLANES, _SUBLANES, _LANES).sum(axis=0)

    init = jnp.zeros((_SUBLANES, _LANES), jnp.float32)
    return lax.fori_loop(0, n_strips, body, init, unroll=min(8, n_strips))


def _bce_logits_partial_kernel(x_ref, o_ref, *, sign, tile_r, strip_r,
                               num_blocks, blocks_per_split, total_rows, split_grid):
    """Accumulate sum(softplus(sign*x)) for the current block into a resident (8,128)."""
    if split_grid:
        s = pl.program_id(0)                  # TensorCore split (core-parallel axis)
        j = pl.program_id(1)                  # streaming block within the split
        global_block = s * blocks_per_split + j
    else:
        j = pl.program_id(0)
        global_block = j

    @pl.when(j == 0)
    def _init():
        o_ref[...] = jnp.zeros_like(o_ref)

    n_strips = tile_r // strip_r

    @pl.when(global_block < num_blocks - 1)
    def _steady():                             # full interior block: no masking
        o_ref[...] += _strip_loop(x_ref, sign=sign, strip_r=strip_r, n_strips=n_strips,
                                  row_offset=0, total_rows=total_rows, mask=False)

    @pl.when(global_block >= num_blocks - 1)
    def _edge():                               # last real (maybe partial) or overshoot block
        o_ref[...] += _strip_loop(x_ref, sign=sign, strip_r=strip_r, n_strips=n_strips,
                                  row_offset=global_block * tile_r,
                                  total_rows=total_rows, mask=True)


def gan_loss(prediction, target_is_real: bool):
    """Equivalent of GANLoss.forward(prediction, target_is_real) -> 0-d float32.

    Accepts f32 or bf16 logits; bf16 is streamed as-is and cast on-chip."""
    sign = -1.0 if target_is_real else 1.0     # y=1 -> softplus(-x); y=0 -> softplus(x)

    flat = jnp.reshape(prediction, (-1,))
    n_valid = flat.shape[0]
    if n_valid == 0:
        return jnp.full((), jnp.nan, dtype=jnp.float32)   # torch: mean over empty = nan

    pad = (-n_valid) % _LANES
    if pad:
        # Rare non-multiple-of-128 case: tiny pad copy; each padded zero adds exactly
        # ln(2), corrected after the kernel.
        flat = jnp.pad(flat, (0, pad))
    rows = flat.shape[0] // _LANES
    x2d = flat.reshape(rows, _LANES)           # metadata-only reshape

    itemsize = jnp.dtype(prediction.dtype).itemsize
    min_rows = _SUBLANES * max(1, 4 // itemsize)         # 8 (f32) / 16 (bf16) / 32 (8-bit)
    target_rows = max(min_rows, _TARGET_BLOCK_BYTES // (_LANES * itemsize))

    rows_rounded = _round_up(rows, min_rows)
    if rows_rounded <= _STRIP_ROWS:
        tile_r, strip_r = rows_rounded, rows_rounded     # one small strip == whole tile
    else:
        tile_r = min(_round_up(rows_rounded, _STRIP_ROWS),
                     _round_up(target_rows, _STRIP_ROWS))
        strip_r = _STRIP_ROWS

    num_blocks = pl.cdiv(rows, tile_r)
    ncores = _num_tensorcores()
    nsplit = ncores if (ncores > 1 and num_blocks >= 2 * ncores) else 1

    def _run(nsplit, dim_semantics):
        bps = pl.cdiv(num_blocks, nsplit)
        split_grid = nsplit > 1
        kernel = functools.partial(
            _bce_logits_partial_kernel, sign=sign, tile_r=tile_r, strip_r=strip_r,
            num_blocks=num_blocks, blocks_per_split=bps, total_rows=rows,
            split_grid=split_grid)
        if split_grid:
            grid = (nsplit, bps)
            # Overshoot blocks (uneven split) are clamped to the last real block (safe
            # DMA); their contribution is zeroed by the row mask in the kernel.
            in_map = lambda s, j: (jnp.minimum(s * bps + j, num_blocks - 1), 0)
            out_map = lambda s, j: (s, 0)
        else:
            grid = (num_blocks,)
            in_map = lambda j: (j, 0)
            out_map = lambda j: (0, 0)
        return pl.pallas_call(
            kernel,
            out_shape=jax.ShapeDtypeStruct((nsplit * _SUBLANES, _LANES), jnp.float32),
            grid_spec=pltpu.PrefetchScalarGridSpec(
                num_scalar_prefetch=0,
                grid=grid,
                in_specs=[pl.BlockSpec((tile_r, _LANES), in_map)],
                out_specs=pl.BlockSpec((_SUBLANES, _LANES), out_map)),
            compiler_params=pltpu.CompilerParams(
                dimension_semantics=dim_semantics,
                vmem_limit_bytes=_VMEM_LIMIT_BYTES),
            cost_estimate=pl.CostEstimate(
                flops=5 * n_valid,
                transcendentals=2 * n_valid,
                bytes_accessed=n_valid * itemsize + nsplit * _SUBLANES * _LANES * 4),
        )(x2d)

    if nsplit > 1:
        try:
            partials = _run(nsplit, (pltpu.CORE_PARALLEL, pltpu.ARBITRARY))
        except Exception:
            # Safe fallback if CORE_PARALLEL is unsupported on this chip/runtime.
            partials = _run(1, ("arbitrary",))
    else:
        partials = _run(1, ("arbitrary",))

    total = jnp.sum(partials) - jnp.float32(pad * _LN2)
    return total / jnp.float32(n_valid)


if __name__ == "__main__":
    key = jax.random.PRNGKey(0)

    # Reference: stable BCE-with-logits vs constant target, mean reduction (== torch).
    def ref(x, y):
        x = x.astype(jnp.float32)
        return jnp.mean(jnp.maximum(x, 0.0) - x * y + jnp.log1p(jnp.exp(-jnp.abs(x))))

    # Primary: discriminator-style logits, NCHW (2, 4, 16, 16).
    pred = jax.random.normal(key, (2, 4, 16, 16), dtype=jnp.float32)
    loss_real = jax.block_until_ready(gan_loss(pred, True))
    loss_fake = jax.block_until_ready(gan_loss(pred, False))
    assert jnp.allclose(loss_real, ref(pred, 1.0), rtol=1e-5, atol=1e-5)
    assert jnp.allclose(loss_fake, ref(pred, 0.0), rtol=1e-5, atol=1e-5)

    # Non-128-multiple element count (lane-pad + last-block mask path).
    pred2 = jax.random.normal(jax.random.PRNGKey(1), (3, 1, 30, 30), dtype=jnp.float32) * 3.0
    assert jnp.allclose(jax.block_until_ready(gan_loss(pred2, True)),
                        ref(pred2, 1.0), rtol=1e-5, atol=1e-5)

    # Larger input: single big block, strip-mined compute.
    pred3 = jax.random.normal(jax.random.PRNGKey(2), (8, 8, 64, 64), dtype=jnp.float32)
    assert jnp.allclose(jax.block_until_ready(gan_loss(pred3, False)),
                        ref(pred3, 0.0), rtol=1e-5, atol=1e-5)

    # Multi-block streaming with a partial last block (2*4*512*520 = 2,129,920 elems).
    pred4 = jax.random.normal(jax.random.PRNGKey(3), (2, 4, 512, 520), dtype=jnp.float32)
    assert jnp.allclose(jax.block_until_ready(gan_loss(pred4, True)),
                        ref(pred4, 1.0), rtol=1e-5, atol=1e-5)

    # bf16 logits accepted as-is (cast on-chip); accumulation stays f32.
    pred5 = jax.random.normal(jax.random.PRNGKey(4), (2, 4, 16, 16), dtype=jnp.bfloat16)
    assert jnp.allclose(jax.block_until_ready(gan_loss(pred5, False)),
                        ref(pred5, 0.0), rtol=1e-4, atol=1e-5)

    print("KERNEL_OK")
</pallas_src>

<mosaic_0001>
module attributes {stable_mosaic.version = 11 : i64} {
  func.func @_bce_logits_partial_kernel(%arg0: i32, %arg1: memref<16x128xf32, #tpu.memory_space<vmem>>, %arg2: memref<8x128xf32, #tpu.memory_space<vmem>>) attributes {dimension_semantics = [#tpu.dimension_semantics<arbitrary>], iteration_bounds = array<i64: 1>, scalar_prefetch = 0 : i64, scratch_operands = 0 : i64, tpu.core_type = #tpu.core_type<tc>, window_params = [{transform_indices = @transform_0, window_bounds = array<i64: 16, 128>}, {pipeline_mode = #tpu.pipeline_mode<synchronous>, transform_indices = @transform_1, window_bounds = array<i64: 8, 128>}]} {
    %c0_i32 = arith.constant 0 : i32
    %0 = arith.cmpi eq, %arg0, %c0_i32 : i32
    %1 = arith.extui %0 : i1 to i32
    %c0_i32_0 = arith.constant 0 : i32
    %2 = arith.cmpi ne, %1, %c0_i32_0 : i32
    scf.if %2 {
      %cst = arith.constant 0.000000e+00 : f32
      %9 = vector.broadcast %cst : f32 to vector<8x128xf32>
      %c0 = arith.constant 0 : index
      %c0_5 = arith.constant 0 : index
      %10 = vector.load %arg2[%c0, %c0_5] : memref<8x128xf32, #tpu.memory_space<vmem>>, vector<8x128xf32>
      tpu.vector_store %arg2[%c0, %c0_5], %9 {strides = array<i32>} : memref<8x128xf32, #tpu.memory_space<vmem>>, vector<8x128xf32>,
    } else {
    }
    %c0_i32_1 = arith.constant 0 : i32
    %3 = arith.cmpi slt, %arg0, %c0_i32_1 : i32
    %4 = arith.extui %3 : i1 to i32
    %c0_i32_2 = arith.constant 0 : i32
    %5 = arith.cmpi ne, %4, %c0_i32_2 : i32
    scf.if %5 {
      %c0 = arith.constant 0 : index
      %c0_5 = arith.constant 0 : index
      %9 = vector.load %arg2[%c0, %c0_5] : memref<8x128xf32, #tpu.memory_space<vmem>>, vector<8x128xf32>
      %cst = arith.constant 0.000000e+00 : f32
      %10 = vector.broadcast %cst : f32 to vector<8x128xf32>
      %c0_i32_6 = arith.constant 0 : i32
      %c16_i32 = arith.constant 16 : i32
      %11 = arith.muli %c0_i32_6, %c16_i32 : i32
      %12 = tpu.assume_multiple %11, 16 : i32
      %13 = arith.index_cast %12 : i32 to index
      %c0_7 = arith.constant 0 : index
      %14 = vector.load %arg1[%13, %c0_7] : memref<16x128xf32, #tpu.memory_space<vmem>>, vector<16x128xf32>
      %cst_8 = arith.constant -1.000000e+00 : f32
      %15 = vector.broadcast %cst_8 : f32 to vector<16x128xf32>
      %16 = arith.mulf %14, %15 : vector<16x128xf32>
      %cst_9 = arith.constant 0.000000e+00 : f32
      %17 = vector.broadcast %cst_9 : f32 to vector<16x128xf32>
      %18 = arith.maximumf %16, %17 : vector<16x128xf32>
      %19 = math.absf %16 : vector<16x128xf32>
      %cst_10 = arith.constant 0.000000e+00 : f32
      %20 = vector.broadcast %cst_10 : f32 to vector<16x128xf32>
      %21 = arith.subf %20, %19 : vector<16x128xf32>
      %22 = math.exp %21 : vector<16x128xf32>
      %23 = math.log1p %22 : vector<16x128xf32>
      %24 = arith.addf %18, %23 : vector<16x128xf32>
      %25 = vector.shape_cast %24 : vector<16x128xf32> to vector<2x8x128xf32>
      %cst_11 = arith.constant dense<0.000000e+00> : vector<8x128xf32>
      %26 = vector.multi_reduction <add>, %25, %cst_11 [0] : vector<2x8x128xf32> to vector<8x128xf32>
      %27 = arith.addf %10, %26 : vector<8x128xf32>
      %c1_i32 = arith.constant 1 : i32
      %28 = arith.addf %9, %27 : vector<8x128xf32>
      %c0_12 = arith.constant 0 : index
      %c0_13 = arith.constant 0 : index
      %29 = vector.load %arg2[%c0_12, %c0_13] : memref<8x128xf32, #tpu.memory_space<vmem>>, vector<8x128xf32>
      tpu.vector_store %arg2[%c0_12, %c0_13], %28 {strides = array<i32>} : memref<8x128xf32, #tpu.memory_space<vmem>>, vector<8x128xf32>,
    } else {
    }
    %c0_i32_3 = arith.constant 0 : i32
    %6 = arith.cmpi sge, %arg0, %c0_i32_3 : i32
    %7 = arith.extui %6 : i1 to i32
    %c0_i32_4 = arith.constant 0 : i32
    %8 = arith.cmpi ne, %7, %c0_i32_4 : i32
    scf.if %8 {
      %c0 = arith.constant 0 : index
      %c0_5 = arith.constant 0 : index
      %9 = vector.load %arg2[%c0, %c0_5] : memref<8x128xf32, #tpu.memory_space<vmem>>, vector<8x128xf32>
      %c16_i32 = arith.constant 16 : i32
      %10 = arith.muli %arg0, %c16_i32 : i32
      %cst = arith.constant 0.000000e+00 : f32
      %11 = vector.broadcast %cst : f32 to vector<8x128xf32>
      %c0_i32_6 = arith.constant 0 : i32
      %c16_i32_7 = arith.constant 16 : i32
      %12 = arith.muli %c0_i32_6, %c16_i32_7 : i32
      %13 = tpu.assume_multiple %12, 16 : i32
      %14 = arith.index_cast %13 : i32 to index
      %c0_8 = arith.constant 0 : index
      %15 = vector.load %arg1[%14, %c0_8] : memref<16x128xf32, #tpu.memory_space<vmem>>, vector<16x128xf32>
      %cst_9 = arith.constant -1.000000e+00 : f32
      %16 = vector.broadcast %cst_9 : f32 to vector<16x128xf32>
      %17 = arith.mulf %15, %16 : vector<16x128xf32>
      %cst_10 = arith.constant 0.000000e+00 : f32
      %18 = vector.broadcast %cst_10 : f32 to vector<16x128xf32>
      %19 = arith.maximumf %17, %18 : vector<16x128xf32>
      %20 = math.absf %17 : vector<16x128xf32>
      %cst_11 = arith.constant 0.000000e+00 : f32
      %21 = vector.broadcast %cst_11 : f32 to vector<16x128xf32>
      %22 = arith.subf %21, %20 : vector<16x128xf32>
      %23 = math.exp %22 : vector<16x128xf32>
      %24 = math.log1p %23 : vector<16x128xf32>
      %25 = arith.addf %19, %24 : vector<16x128xf32>
      %26 = tpu.iota {dimensions = array<i32: 0>} : vector<16x128xi32>
      %27 = vector.broadcast %13 : i32 to vector<16x128xi32>
      %28 = arith.addi %26, %27 : vector<16x128xi32>
      %29 = vector.broadcast %10 : i32 to vector<16x128xi32>
      %30 = arith.addi %28, %29 : vector<16x128xi32>
      %c16_i32_12 = arith.constant 16 : i32
      %31 = vector.broadcast %c16_i32_12 : i32 to vector<16x128xi32>
      %32 = arith.cmpi slt, %30, %31 : vector<16x128xi32>
      %cst_13 = arith.constant 0.000000e+00 : f32
      %33 = vector.broadcast %cst_13 : f32 to vector<16x128xf32>
      %34 = arith.select %32, %25, %33 : vector<16x128xi1>, vector<16x128xf32>
      %35 = vector.shape_cast %34 : vector<16x128xf32> to vector<2x8x128xf32>
      %cst_14 = arith.constant dense<0.000000e+00> : vector<8x128xf32>
      %36 = vector.multi_reduction <add>, %35, %cst_14 [0] : vector<2x8x128xf32> to vector<8x128xf32>
      %37 = arith.addf %11, %36 : vector<8x128xf32>
      %c1_i32 = arith.constant 1 : i32
      %38 = arith.addf %9, %37 : vector<8x128xf32>
      %c0_15 = arith.constant 0 : index
      %c0_16 = arith.constant 0 : index
      %39 = vector.load %arg2[%c0_15, %c0_16] : memref<8x128xf32, #tpu.memory_space<vmem>>, vector<8x128xf32>
      tpu.vector_store %arg2[%c0_15, %c0_16], %38 {strides = array<i32>} : memref<8x128xf32, #tpu.memory_space<vmem>>, vector<8x128xf32>,
    } else {
    }
    return
  }
  func.func @transform_0(%arg0: i32) -> (i32, i32) {
    %c0_i32 = arith.constant 0 : i32
    %c0_i32_0 = arith.constant 0 : i32
    return %arg0, %c0_i32 : i32, i32
  }
  func.func @transform_1(%arg0: i32) -> (i32, i32) {
    %c0_i32 = arith.constant 0 : i32
    %c0_i32_0 = arith.constant 0 : i32
    %c0_i32_1 = arith.constant 0 : i32
    return %c0_i32, %c0_i32_0 : i32, i32
  }
}

</mosaic_0001>

<bundles_post_ra>
// kernel: tpu_custom_call.1
= control target key start
LH: loop header
LB: loop body
LE: loop exit
PB: predicated region body
PF: predicated region fallthrough
CT: control target
= control target key end

     0   :  { %6 = vsyncpa [#allocation3], 0  ;;  %s220_s0 = inlined_call_operand.hbm [shape: f32[16,128], index: 0, kind: input, shape index: {}]   ;;  %s221_s1 = inlined_call_operand.hbm [shape: f32[8,128], index: 1, kind: output, shape index: {}]  }
   0x1   :  { %7 = vsyncpa [#allocation4], 0  ;;  %s200_s6 = smov [#allocation2]  }
   0x2   :  { %s13_s7 = sshll.u32 %s200_s6, 4  ;;  %s14_s7 = int_to_ptr.vmem [resolvable:$true] %s13_s7 }
   0x3   :  { %s164_s8 = scalar_lea.vmem %s14_s7, 256  ;;  %p169_p1 = scmp.lt.s32.totalorder %s14_s7, %s14_s7 }
   0x4   :  { %p165_p0 = scmp.ne.s32.totalorder %s14_s7, %s164_s8  ;;  %p170_p2 = scmp.lt.s32.totalorder %s164_s8, %s164_s8 }
   0x6   :  { %p171_p3 = por %p170_p2, %p169_p1 }
   0x8   :  { %p172_p4 = pnand %p171_p3, %p165_p0 }
   0xa   :  { %175 = shalt.err (!%p172_p4)
}
   0xb   :  { %s201_s9 = smov 128   ;;  %s202_s10 = smov 8  }
   0xc   :  { %19 = dma.hbm_to_vmem [thread:$0]  %s220_s0, 256, %s14_s7, [#allocation3], %s201_s9, %s201_s9, %s202_s10  }
   0xd   :  { %196 = dma.done.wait [#allocation3], 256  }
   0xe   :  { %197 = vsyncadd [#allocation3], 4294967040  ;;  %v77_v0 = vld [vmem:[#allocation2] sm:$0xff]  ;;  %v78_v1 = vld [vmem:[#allocation2 + $0x8] sm:$0xff]  ;;  %s203_s0 = smov [#allocation5]  }
   0xf   :  { %v79_v2 = vmul.f32 -1.0, %v77_v0  ;;  %v80_v3 = vmul.f32 -1.0, %v78_v1  ;;  %s134_s13 = sshll.u32 %s203_s0, 4  ;;  %s135_s13 = int_to_ptr.vmem [resolvable:$true] %s134_s13 }
  0x10   :  { %s176_s14 = scalar_lea.vmem %s135_s13, 128  ;;  %p181_p6 = scmp.lt.s32.totalorder %s135_s13, %s135_s13 }
  0x11   :  { %v83_v4 = vand.u32 2147483647, %v79_v2  ;;  %v84_v5 = vand.u32 2147483647, %v80_v3  ;;  %v81_v22 = vmax.f32 %v79_v2, 0.0  ;;  %v82_v25 = vmax.f32 %v80_v3, 0.0  ;;  %p177_p5 = scmp.ne.s32.totalorder %s135_s13, %s176_s14  ;;  %p182_p7 = scmp.lt.s32.totalorder %s176_s14, %s176_s14 }
  0x13   :  { %v85_v6 = vsub.f32 0.0, %v83_v4  ;;  %v86_v7 = vsub.f32 0.0, %v84_v5  ;;  %p183_p8 = por %p182_p7, %p181_p6 }
  0x15   :  { %v87_v8 = vmul.f32 1.442695, %v85_v6  ;;  %v89_v9 = vmul.f32 1.442695, %v86_v7  ;;  %p184_p9 = pnand %p183_p8, %p177_p5 }
  0x17   :  { %148 = vpow2.f32 %v87_v8 }
  0x18   :  { %150 = vpow2.f32 %v89_v9 }
  0x24   :  { %v149_v10 = vpop.eup %148 }
  0x25   :  { %v151_v11 = vpop.eup %150  ;;  %v91_v12 = vadd.f32 1.0, %v149_v10  ;;  %v94_v14 = vmul.f32 -0.5, %v149_v10  ;;  %v97_v17 = vand.u32 2147483647, %v149_v10 }
  0x26   :  { %v100_v13 = vadd.f32 1.0, %v151_v11  ;;  %v103_v15 = vmul.f32 -0.5, %v151_v11  ;;  %v106_v19 = vand.u32 2147483647, %v151_v11 }
  0x27   :  { %152 = vlog2.f32 %v91_v12  ;;  %v95_v16 = vadd.f32 1.0, %v94_v14  ;;  %vm98_vm0 = vcmp.lt.f32.partialorder %v97_v17, 0.0004427343 }
  0x28   :  { %154 = vlog2.f32 %v100_v13  ;;  %v104_v18 = vadd.f32 1.0, %v103_v15  ;;  %vm107_vm1 = vcmp.lt.f32.partialorder %v106_v19, 0.0004427343 }
  0x29   :  { %v96_v20 = vmul.f32 %v149_v10, %v95_v16 }
  0x2a   :  { %v105_v23 = vmul.f32 %v151_v11, %v104_v18 }
  0x34   :  { %v153_v21 = vpop.eup %152 }
  0x35   :  { %v155_v24 = vpop.eup %154  ;;  %v93_v26 = vmul.f32 0.6931472, %v153_v21 }
  0x36   :  { %v102_v27 = vmul.f32 0.6931472, %v155_v24 }
  0x37   :  { %v99_v28 = vsel %vm98_vm0, %v96_v20, %v93_v26 }
  0x38   :  { %v108_v29 = vsel %vm107_vm1, %v105_v23, %v102_v27  ;;  %v109_v30 = vadd.f32 %v99_v28, %v81_v22 }
  0x39   :  { %v110_v31 = vadd.f32 %v108_v29, %v82_v25 }
  0x3b   :  { %v124_v32 = vadd.f32 %v110_v31, %v109_v30 }
  0x3d   :  { %127 = vst [vmem:[#allocation5] sm:$0xff] %v124_v32 }
  0x3e   :  { %187 = shalt.err (!%p184_p9)
}
  0x3f   :  { %137 = dma.vmem_to_hbm [thread:$0]  %s135_s13, 128, %s221_s1, [#allocation4]  }
  0x40   :  { %198 = dma.done.wait [#allocation4], 128  }
  0x41   :  { %199 = vsyncadd [#allocation4], 4294967168 }
  0x42   :  { %141 = vsyncpa [#allocation3], 1 }
  0x43   :  { %142 = vsyncpa [#allocation4], 1 }

</bundles_post_ra>
